<compile_context>
chip_gen: v7x
topology: tpu7x:2x2x1
jax: 0.10.0
libtpu: 0.0.40
codegen_flags: <defaults>
</compile_context>

<pallas_src>
import functools

import jax
import jax.numpy as jnp
from jax.experimental import pallas as pl
from jax.experimental.pallas import tpu as pltpu

_LANE = 128
_SUBLANE = 8


def _mask_kernel(x_ref, thr_ref, o_ref, *, by_magnitude):
    # x_ref: (Rt, Lt)   thr_ref: (Rt, 1)   o_ref: (Rt, Lt)
    x = x_ref[...]
    thr = thr_ref[...]                      # broadcasts over the lane axis
    mags = jnp.abs(x) if by_magnitude else x
    o_ref[...] = jnp.where(mags > thr, x, jnp.zeros_like(x))


def _subtract_kernel(x_ref, thr_ref, o_ref):
    # x_ref: (Rt, Lt)   thr_ref: (Rt, 1)   o_ref: (Rt, Lt)
    x = x_ref[...]
    thr = thr_ref[...]
    o_ref[...] = jnp.maximum(x - thr, jnp.zeros_like(x))


def _default_tiles(rows, lanes, itemsize, tile_budget_bytes=16 * 1024 * 1024):
    """Pick (row_tile, lane_tile) so the double-buffered in+out footprint
    (2 bufs x 2 arrays x rt x lt x itemsize) stays under tile_budget_bytes."""
    max_tile_elems = max(_SUBLANE * _LANE, tile_budget_bytes // (4 * itemsize))
    lt = min(lanes, 2048)                   # lanes is a multiple of 128 already
    rt_cap = max(_SUBLANE, (max_tile_elems // lt) // _SUBLANE * _SUBLANE)
    rt = min(rows, rt_cap)                  # rows is a multiple of 8 already
    return rt, lt


@functools.partial(
    jax.jit,
    static_argnames=("discontinuity_mode", "by_magnitude", "row_tile", "lane_tile"),
)
def spatially_sparse(
    x,
    thresholds,
    *,
    discontinuity_mode="none",
    by_magnitude=True,
    row_tile=None,
    lane_tile=None,
):
    """Pallas implementation of SpatiallySparse.forward (eval mode).

    x:          (N, C, L)
    thresholds: (C,)  -- the module's non-trainable parameter
    """
    N, C, L = x.shape
    dtype = x.dtype
    itemsize = jnp.dtype(dtype).itemsize

    if discontinuity_mode == "none":
        kernel = functools.partial(_mask_kernel, by_magnitude=by_magnitude)
    elif discontinuity_mode == "subtraction":
        assert not by_magnitude, "subtraction mode requires by_magnitude=False"
        kernel = _subtract_kernel
    else:
        raise RuntimeError(f"Incorrect discontinuity mode: {discontinuity_mode}")

    # ---- Flatten (N, C) -> rows, replicate per-channel thresholds per row. ---
    # NOTE: thresholds are cast to x.dtype (matches the module running in that
    # dtype); for bf16 inputs boundary elements may differ from an f32 compare.
    R = N * C
    x2 = x.reshape(R, L)
    thr_rows = jnp.tile(thresholds.astype(dtype), N).reshape(R, 1)

    # ---- Pad to (8,128)-aligned extents; fringe is sliced away afterwards. ---
    rp = -R % _SUBLANE
    lp = -L % _LANE
    if rp or lp:
        x2 = jnp.pad(x2, ((0, rp), (0, lp)))
    if rp:
        thr_rows = jnp.pad(thr_rows, ((0, rp), (0, 0)))
    Rp, Lp = R + rp, L + lp

    rt, lt = _default_tiles(Rp, Lp, itemsize)
    if lane_tile is not None:
        lt = lane_tile
    if row_tile is not None:
        rt = row_tile

    grid = (pl.cdiv(Rp, rt), pl.cdiv(Lp, lt))

    out2 = pl.pallas_call(
        kernel,
        out_shape=jax.ShapeDtypeStruct((Rp, Lp), dtype),
        grid_spec=pltpu.PrefetchScalarGridSpec(
            num_scalar_prefetch=0,
            grid=grid,
            in_specs=[
                pl.BlockSpec((rt, lt), lambda r, l: (r, l)),
                pl.BlockSpec((rt, 1), lambda r, l: (r, 0)),
            ],
            out_specs=pl.BlockSpec((rt, lt), lambda r, l: (r, l)),
        ),
        compiler_params=pltpu.CompilerParams(
            dimension_semantics=("parallel", "parallel"),
            vmem_limit_bytes=32 * 1024 * 1024,
        ),
    )(x2, thr_rows)

    return out2[:R, :L].reshape(N, C, L)


# ------------------------------- references ---------------------------------
def _reference_none(x, thresholds, by_magnitude=True):
    mags = jnp.abs(x) if by_magnitude else x
    return x * (mags > thresholds[None, :, None])


def _reference_subtraction(x, thresholds):
    return jax.nn.relu(x - thresholds[None, :, None])


if __name__ == "__main__":
    key = jax.random.PRNGKey(0)
    kx1, kx2, kt1, kt2 = jax.random.split(key, 4)

    # Case 1: nicely aligned small shape.
    N1, C1, L1 = 2, 8, 256
    x1 = jax.random.normal(kx1, (N1, C1, L1), dtype=jnp.float32)
    thr1 = jax.random.uniform(kt1, (C1,), dtype=jnp.float32) * 0.5

    out_none = jax.block_until_ready(
        spatially_sparse(x1, thr1, discontinuity_mode="none", by_magnitude=True)
    )
    out_sub = jax.block_until_ready(
        spatially_sparse(
            x1, thr1, discontinuity_mode="subtraction", by_magnitude=False
        )
    )
    assert out_none.shape == (N1, C1, L1) and out_none.dtype == x1.dtype
    assert jnp.allclose(out_none, _reference_none(x1, thr1), atol=1e-6, rtol=1e-6)
    assert jnp.allclose(out_sub, _reference_subtraction(x1, thr1), atol=1e-6, rtol=1e-6)

    # Case 2: ragged shape (C not a multiple of 8, L not a multiple of 128)
    # exercising the flatten + pad + slice path.
    N2, C2, L2 = 2, 5, 200
    x2 = jax.random.normal(kx2, (N2, C2, L2), dtype=jnp.float32)
    thr2 = jax.random.uniform(kt2, (C2,), dtype=jnp.float32) * 0.5

    out_none2 = jax.block_until_ready(
        spatially_sparse(x2, thr2, discontinuity_mode="none", by_magnitude=True)
    )
    out_none2_nomag = jax.block_until_ready(
        spatially_sparse(x2, thr2, discontinuity_mode="none", by_magnitude=False)
    )
    assert out_none2.shape == (N2, C2, L2)
    assert jnp.allclose(out_none2, _reference_none(x2, thr2), atol=1e-6, rtol=1e-6)
    assert jnp.allclose(
        out_none2_nomag,
        _reference_none(x2, thr2, by_magnitude=False),
        atol=1e-6,
        rtol=1e-6,
    )

    print("KERNEL_OK")
</pallas_src>

<mosaic_0001>
module attributes {stable_mosaic.version = 11 : i64} {
  func.func @_mask_kernel(%arg0: i32, %arg1: i32, %arg2: memref<16x256xf32, #tpu.memory_space<vmem>>, %arg3: memref<16x1xf32, #tpu.memory_space<vmem>>, %arg4: memref<16x256xf32, #tpu.memory_space<vmem>>) attributes {dimension_semantics = [#tpu.dimension_semantics<parallel>, #tpu.dimension_semantics<parallel>], iteration_bounds = array<i64: 1, 1>, scalar_prefetch = 0 : i64, scratch_operands = 0 : i64, tpu.core_type = #tpu.core_type<tc>, window_params = [{transform_indices = @transform_0, window_bounds = array<i64: 16, 256>}, {transform_indices = @transform_1, window_bounds = array<i64: 16, 1>}, {transform_indices = @transform_2, window_bounds = array<i64: 16, 256>}]} {
    %c0 = arith.constant 0 : index
    %c0_0 = arith.constant 0 : index
    %0 = vector.load %arg2[%c0, %c0_0] : memref<16x256xf32, #tpu.memory_space<vmem>>, vector<16x256xf32>
    %c0_1 = arith.constant 0 : index
    %c0_2 = arith.constant 0 : index
    %1 = vector.load %arg3[%c0_1, %c0_2] : memref<16x1xf32, #tpu.memory_space<vmem>>, vector<16x1xf32>
    %2 = math.absf %0 : vector<16x256xf32>
    %3 = vector.broadcast %1 : vector<16x1xf32> to vector<16x256xf32>
    %4 = arith.cmpf ogt, %2, %3 : vector<16x256xf32>
    %cst = arith.constant 0.000000e+00 : f32
    %5 = vector.broadcast %cst : f32 to vector<16x256xf32>
    %6 = arith.select %4, %0, %5 : vector<16x256xi1>, vector<16x256xf32>
    %c0_3 = arith.constant 0 : index
    %c0_4 = arith.constant 0 : index
    %7 = vector.load %arg4[%c0_3, %c0_4] : memref<16x256xf32, #tpu.memory_space<vmem>>, vector<16x256xf32>
    tpu.vector_store %arg4[%c0_3, %c0_4], %6 {strides = array<i32>} : memref<16x256xf32, #tpu.memory_space<vmem>>, vector<16x256xf32>,
    return
  }
  func.func @transform_0(%arg0: i32, %arg1: i32) -> (i32, i32) {
    %c0_i32 = arith.constant 0 : i32
    return %arg0, %arg1 : i32, i32
  }
  func.func @transform_1(%arg0: i32, %arg1: i32) -> (i32, i32) {
    %c0_i32 = arith.constant 0 : i32
    %c0_i32_0 = arith.constant 0 : i32
    return %arg0, %c0_i32 : i32, i32
  }
  func.func @transform_2(%arg0: i32, %arg1: i32) -> (i32, i32) {
    %c0_i32 = arith.constant 0 : i32
    return %arg0, %arg1 : i32, i32
  }
}

</mosaic_0001>

<bundles_post_ra>
// kernel: tile.8
= control target key start
LH: loop header
LB: loop body
LE: loop exit
PB: predicated region body
PF: predicated region fallthrough
CT: control target
= control target key end

     0   :  { %s22_s0 = inlined_call_operand.vmem [shape: f32[8], index: 0, kind: input, shape index: {}]   ;;  %s23_s1 = inlined_call_operand.vmem [shape: f32[2,8], index: 1, kind: output, shape index: {}]  }
   0x1   :  { %v4_v0 = vld [vmem:[%s22_s0] ss:$0 sm:$0xff] }
   0x2   :  { %5 = vst [vmem:[%s23_s1] sm:$0x3] %v4_v0 }

// kernel: tile.0
= control target key start
LH: loop header
LB: loop body
LE: loop exit
PB: predicated region body
PF: predicated region fallthrough
CT: control target
= control target key end

     0   :  { %s66_s8 = smov 125   ;;  %vm7_vm0 = vcmask 7168   ;;  %s67_s11 = smov 126   ;;  %s117_s0 = inlined_call_operand.vmem [shape: f32[2,8], index: 0, kind: input, shape index: {}]   ;;  %s118_s1 = inlined_call_operand.vmem [shape: f32[16,1], index: 1, kind: output, shape index: {}]  }
   0x1   :  { %v4_v0 = vld [vmem:[%s117_s0] sm:$0x3]  ;;  %s65_s0 = smov 127   ;;  %s68_s12 = smov 124  }
   0x2   :  { %5 = vst [vmem:[#allocation0] sm:$0x3] %v4_v0  ;;  %s69_s13 = smov 123   ;;  %s70_s14 = smov 122  }
   0x3   :  { %s71_s15 = smov 121  }
   0x9   :  { %v9_v1 = vld [vmem:[#allocation0] sm:$0x3]  }
   0xa   :  { %v21_v2 = vld [vmem:[#allocation0] sm:$0x3]   ;;  %10 = vrot.lane.b32.xlu0 %v9_v1, %s65_s0 }
   0xb   :  { %22 = vrot.lane.b32.xlu1 %v21_v2, %s66_s8  ;;  %v15_v3 = vld [vmem:[#allocation0] sm:$0x3]  }
   0xc   :  { %v27_v4 = vld [vmem:[#allocation0] sm:$0x3]  }
   0xd   :  { %v6_v5 = vld [vmem:[#allocation0] sm:$0x3]  }
   0xe   :  { %8 = vst.msk [vmem:[%s118_s1] ss:$8 sm:$0x3] %vm7_vm0, %v6_v5   ;;  %16 = vrot.lane.b32.xlu0 %v15_v3, %s67_s11  ;;  %v33_v6 = vld [vmem:[#allocation0] sm:$0x3]  }
   0xf   :  { %28 = vrot.lane.b32.xlu1 %v27_v4, %s68_s12  ;;  %v39_v7 = vld [vmem:[#allocation0] sm:$0x3]  }
  0x10   :  { %v45_v8 = vld [vmem:[#allocation0] sm:$0x3]  }
  0x12   :  { %34 = vrot.lane.b32.xlu0 %v33_v6, %s69_s13 }
  0x13   :  { %40 = vrot.lane.b32.xlu1 %v39_v7, %s70_s14 }
  0x16   :  { %46 = vrot.lane.b32.xlu0 %v45_v8, %s71_s15 }
  0x7c   :  { %v11_v9 = vpop.permute.xlu0 %10  }
  0x7d   :  { %v23_v10 = vpop.permute.xlu1 %22   ;;  %51 = vst.msk [vmem:[%s118_s1 + $0x1] ss:$8 sm:$0x3] %vm7_vm0, %v11_v9  }
  0x7e   :  { %53 = vst.msk [vmem:[%s118_s1 + $0x3] ss:$8 sm:$0x3] %vm7_vm0, %v23_v10  }
  0x80   :  { %v17_v11 = vpop.permute.xlu0 %16  }
  0x81   :  { %v29_v12 = vpop.permute.xlu1 %28   ;;  %52 = vst.msk [vmem:[%s118_s1 + $0x2] ss:$8 sm:$0x3] %vm7_vm0, %v17_v11  }
  0x82   :  { %54 = vst.msk [vmem:[%s118_s1 + $0x4] ss:$8 sm:$0x3] %vm7_vm0, %v29_v12  }
  0x84   :  { %v35_v13 = vpop.permute.xlu0 %34  }
  0x85   :  { %v41_v14 = vpop.permute.xlu1 %40   ;;  %55 = vst.msk [vmem:[%s118_s1 + $0x5] ss:$8 sm:$0x3] %vm7_vm0, %v35_v13  }
  0x86   :  { %56 = vst.msk [vmem:[%s118_s1 + $0x6] ss:$8 sm:$0x3] %vm7_vm0, %v41_v14  }
  0x88   :  { %v47_v15 = vpop.permute.xlu0 %46  }
  0x89   :  { %57 = vst.msk [vmem:[%s118_s1 + $0x7] ss:$8 sm:$0x3] %vm7_vm0, %v47_v15  }

// kernel: spatially_sparse.1
= control target key start
LH: loop header
LB: loop body
LE: loop exit
PB: predicated region body
PF: predicated region fallthrough
CT: control target
= control target key end

     0   :  { %7 = vsyncpa [#allocation3], 0  ;;  %s185_s0 = inlined_call_operand.hbm [shape: f32[16,256], index: 0, kind: input, shape index: {}]   ;;  %s186_s1 = inlined_call_operand.vmem [shape: f32[16,1], index: 1, kind: input, shape index: {}]   ;;  %s187_s2 = inlined_call_operand.hbm [shape: f32[16,256], index: 2, kind: output, shape index: {}]  }
   0x1   :  { %8 = vsyncpa [#allocation4], 0  ;;  %s129_s9 = smov [#allocation2]   ;;  %s81_s13 = scalar_lea.hbm %s185_s0, 512 }
   0x2   :  { %s14_s10 = sshll.u32 %s129_s9, 4  ;;  %p82_p0 = scmp.ne.s32.totalorder %s185_s0, %s81_s13  ;;  %s15_s10 = int_to_ptr.vmem [resolvable:$true] %s14_s10 }
   0x3   :  { %p85_p1 = scmp.lt.u32.totalorder %s81_s13, %s185_s0 }
   0x5   :  { %p87_p2 = pnand %p85_p1, %p82_p0 }
   0x7   :  { %90 = shalt.err (!%p87_p2)
}
   0x8   :  { %s91_s18 = scalar_lea.vmem %s15_s10, 512  ;;  %p96_p4 = scmp.lt.s32.totalorder %s15_s10, %s15_s10 }
   0x9   :  { %p92_p3 = scmp.ne.s32.totalorder %s15_s10, %s91_s18  ;;  %p97_p5 = scmp.lt.s32.totalorder %s91_s18, %s91_s18 }
   0xb   :  { %p98_p6 = por %p97_p5, %p96_p4 }
   0xd   :  { %p99_p7 = pnand %p98_p6, %p92_p3 }
   0xf   :  { %102 = shalt.err (!%p99_p7)
}
  0x10   :  { %s130_s19 = smov 256   ;;  %s131_s20 = smov 16  }
  0x11   :  { %20 = dma.hbm_to_vmem [thread:$0]  %s185_s0, 512, %s15_s10, [#allocation3], %s130_s19, %s130_s19, %s131_s20  }
  0x12   :  { %125 = dma.done.wait [#allocation3], 512  }
  0x13   :  { %126 = vsyncadd [#allocation3], 4294966784  ;;  %v132_v0 = vmov 0   ;;  %v30_v1 = vld [vmem:[%s186_s1] sm:$0xff]  ;;  %v31_v2 = vld [vmem:[%s186_s1 + $0x8] sm:$0xff]  ;;  %s133_s0 = smov [#allocation5]  }
  0x14   :  { %80 = vset.pattern.permute.xlu0 %v132_v0  ;;  %v26_v3 = vld [vmem:[#allocation2] sm:$0xff]  ;;  %v27_v4 = vld [vmem:[#allocation2 + $0x8] sm:$0xff]  ;;  %v28_v7 = vld [vmem:[#allocation2 + $0x10] sm:$0xff]  ;;  %s63_s27 = sshll.u32 %s133_s0, 4  ;;  %s64_s27 = int_to_ptr.vmem [resolvable:$true] %s63_s27 }
  0x15   :  { %38 = vperm.xlu0 %80, %v30_v1   ;;  %v32_v5 = vand.u32 2147483647, %v26_v3  ;;  %v33_v6 = vand.u32 2147483647, %v27_v4  ;;  %v29_v8 = vld [vmem:[#allocation2 + $0x18] sm:$0xff]  ;;  %s103_s1 = scalar_lea.vmem %s64_s27, 512  ;;  %p108_p9 = scmp.lt.s32.totalorder %s64_s27, %s64_s27 }
  0x16   :  { %v34_v10 = vand.u32 2147483647, %v28_v7  ;;  %v35_v11 = vand.u32 2147483647, %v29_v8  ;;  %p104_p8 = scmp.ne.s32.totalorder %s64_s27, %s103_s1  ;;  %p109_p10 = scmp.lt.s32.totalorder %s103_s1, %s103_s1 }
  0x18   :  { %p110_p11 = por %p109_p10, %p108_p9 }
  0x19   :  { %43 = vperm.xlu0 %80, %v31_v2  }
  0x1a   :  { %p111_p12 = pnand %p110_p11, %p104_p8 }
  0x94   :  { %v39_v9 = vpop.permute.xlu0 %38 }
  0x95   :  { %vm46_vm0 = vcmp.gt.f32.partialorder %v32_v5, %v39_v9  ;;  %vm47_vm1 = vcmp.gt.f32.partialorder %v33_v6, %v39_v9 }
  0x96   :  { %v50_v12 = vsel %vm46_vm0, %v26_v3, 0.0  ;;  %v51_v13 = vsel %vm47_vm1, %v27_v4, 0.0 }
  0x97   :  { %54 = vst [vmem:[#allocation5] sm:$0xff] %v50_v12  ;;  %55 = vst [vmem:[#allocation5 + $0x8] sm:$0xff] %v51_v13 }
  0x98   :  { %v44_v14 = vpop.permute.xlu0 %43 }
  0x99   :  { %vm48_vm2 = vcmp.gt.f32.partialorder %v34_v10, %v44_v14  ;;  %vm49_vm3 = vcmp.gt.f32.partialorder %v35_v11, %v44_v14 }
  0x9a   :  { %v52_v15 = vsel %vm48_vm2, %v28_v7, 0.0  ;;  %v53_v16 = vsel %vm49_vm3, %v29_v8, 0.0 }
  0x9b   :  { %56 = vst [vmem:[#allocation5 + $0x10] sm:$0xff] %v52_v15  ;;  %57 = vst [vmem:[#allocation5 + $0x18] sm:$0xff] %v53_v16 }
  0x9c   :  { %114 = shalt.err (!%p111_p12)
}
  0x9d   :  { %s115_s30 = scalar_lea.hbm %s187_s2, 512 }
  0x9e   :  { %p116_p13 = scmp.ne.s32.totalorder %s187_s2, %s115_s30  ;;  %p119_p0 = scmp.lt.u32.totalorder %s115_s30, %s187_s2 }
  0xa0   :  { %p121_p1 = pnand %p119_p0, %p116_p13 }
  0xa2   :  { %124 = shalt.err (!%p121_p1)
}
  0xa3   :  { %69 = dma.vmem_to_hbm [thread:$0]  %s64_s27, 512, %s187_s2, [#allocation4], %s130_s19, %s130_s19, %s131_s20  }
  0xa4   :  { %127 = dma.done.wait [#allocation4], 512  }
  0xa5   :  { %128 = vsyncadd [#allocation4], 4294966784 }
  0xa6   :  { %73 = vsyncpa [#allocation3], 1 }
  0xa7   :  { %74 = vsyncpa [#allocation4], 1 }

</bundles_post_ra>
